<compile_context>
chip_gen: v5e
topology: v5e:2x2
jax: 0.10.0
libtpu: 0.0.40
codegen_flags: <defaults>
</compile_context>

<pallas_src>
import functools

import jax
import jax.numpy as jnp
from jax import lax
from jax.experimental import pallas as pl
from jax.experimental.pallas import tpu as pltpu


def _itemsize(dt):
    return jnp.dtype(dt).itemsize


def _vmem_capacity_bytes():
    """Physical VMEM per core (falls back to a conservative 64 MiB)."""
    try:
        return int(pltpu.get_tpu_info().vmem_capacity_bytes)
    except Exception:
        return 64 * 1024 * 1024


def _pick_batch_block(B, T, C, hs, x_itemsize, out_itemsize, mxu_itemsize,
                      vmem_budget, min_steps=4):
    """Largest batch block that fits the VMEM budget, keeping >= min_steps grid
    steps so the pipeline can overlap DMA with compute (and both TensorCores
    get work on v7x)."""
    def block_bytes(bt):
        n = bt * T
        return (2 * n * C * x_itemsize          # double-buffered x block
                + 2 * n * hs * out_itemsize     # double-buffered out block
                + n * 3 * hs * 4                # fused qkv result (f32)
                + 3 * n * hs * mxu_itemsize     # q, k, v MXU operands
                + bt * T * T * 4                # scores / softmax (f32)
                + bt * T * T * mxu_itemsize)    # p cast for the PV matmul

    bt = max(1, B // max(2, min(B, min_steps)))
    while bt > 1 and block_bytes(bt) > vmem_budget:
        bt = max(1, bt // 2)
    return bt


def _head_kernel(x_ref, w_ref, o_ref, *, scale, hs, mxu_dtype, lane_dense):
    x = x_ref[...]                                   # (Bt, T, C)
    Bt, T, C = x.shape

    # --- Fused QKV projection: one MXU matmul over the flattened view ------
    # (Bt, T, C) -> (Bt*T, C) folds leading dims only (T is a multiple of 8),
    # so this is layout-free.  Operands in bf16, accumulation in f32.
    x2 = x.reshape(Bt * T, C).astype(mxu_dtype)
    qkv = jnp.dot(x2, w_ref[...],
                  preferred_element_type=jnp.float32)       # (Bt*T, 3*hs) f32

    # Split q|k|v.  Softmax scale folded into q once (reference scales by
    # n_embd**-0.5, i.e. the full embedding dim C, not head_size).
    q = (qkv[:, 0 * hs:1 * hs] * scale).astype(mxu_dtype).reshape(Bt, T, hs)
    k = qkv[:, 1 * hs:2 * hs].astype(mxu_dtype).reshape(Bt, T, hs)
    v = qkv[:, 2 * hs:3 * hs].astype(mxu_dtype).reshape(Bt, T, hs)

    # --- Batched QK^T: contract last axes (no explicit transpose/XLU) ------
    wei = lax.dot_general(q, k, (((2,), (2,)), ((0,), (0,))),
                          preferred_element_type=jnp.float32)   # (Bt, T, T)

    # --- Causal mask: large-negative fill (NaN-safe vs -inf) ---------------
    row = lax.broadcasted_iota(jnp.int32, (T, T), 0)
    col = lax.broadcasted_iota(jnp.int32, (T, T), 1)
    wei = jnp.where((col <= row)[None, :, :], wei, -1e30)

    # --- Softmax, entirely in f32; normalization on the EUP slot -----------
    wei = wei - jnp.max(wei, axis=-1, keepdims=True)
    p = jnp.exp(wei)
    p = p * pl.reciprocal(jnp.sum(p, axis=-1, keepdims=True), approx=True)
    # Attention dropout: identity (inference semantics).

    # --- Batched PV: (Bt,T,T) @ (Bt,T,hs) -> (Bt,T,hs), f32 accumulation ---
    out = lax.dot_general(p.astype(mxu_dtype), v,
                          (((2,), (1,)), ((0,), (0,))),
                          preferred_element_type=jnp.float32)

    if lane_dense:
        # Lane-dense slab store: last dim T*hs instead of hs -> fewer masked
        # partial stores (biggest single measured lever for small head dims).
        o_ref[...] = out.reshape(Bt, 1, T * hs).astype(o_ref.dtype)
    else:
        o_ref[...] = out.astype(o_ref.dtype)


def head_forward(x, wk, wq, wv, *, batch_block=None, mxu_dtype=jnp.bfloat16):
    """Pallas forward for `Head`. x: (B, T, C); wk/wq/wv: (C, head_size)."""
    B, T, C = x.shape
    hs = wk.shape[1]
    scale = C ** (-0.5)          # matches the PyTorch reference (n_embd**-0.5)

    if mxu_dtype is None:
        mxu_dtype = x.dtype

    # Fuse the projection weights once in the wrapper: (C, 3*hs), order q|k|v,
    # already cast to the MXU operand dtype (single small DMA into the kernel).
    wqkv = jnp.concatenate([wq, wk, wv], axis=1).astype(mxu_dtype)

    vmem_cap = _vmem_capacity_bytes()
    vmem_limit = min(int(vmem_cap * 0.75), 100 * 1024 * 1024)

    if batch_block is None:
        batch_block = _pick_batch_block(
            B, T, C, hs,
            x_itemsize=_itemsize(x.dtype),
            out_itemsize=_itemsize(x.dtype),
            mxu_itemsize=_itemsize(mxu_dtype),
            vmem_budget=int(vmem_limit * 0.6))
    grid = (pl.cdiv(B, batch_block),)

    cost = pl.CostEstimate(
        flops=2 * B * T * C * 3 * hs + 4 * B * T * T * hs,
        transcendentals=B * T * T,
        bytes_accessed=(B * T * C * _itemsize(x.dtype)
                        + C * 3 * hs * _itemsize(mxu_dtype)
                        + B * T * hs * _itemsize(x.dtype)))

    def build(lane_dense, single_buffer_weights):
        kernel = functools.partial(_head_kernel, scale=scale, hs=hs,
                                   mxu_dtype=mxu_dtype, lane_dense=lane_dense)
        w_kwargs = (dict(pipeline_mode=pl.Buffered(1))
                    if single_buffer_weights else {})
        wspec = pl.BlockSpec(wqkv.shape, lambda b: (0, 0), **w_kwargs)
        if lane_dense:
            out_shape = jax.ShapeDtypeStruct((B, 1, T * hs), x.dtype)
            out_spec = pl.BlockSpec((batch_block, 1, T * hs),
                                    lambda b: (b, 0, 0))
        else:
            out_shape = jax.ShapeDtypeStruct((B, T, hs), x.dtype)
            out_spec = pl.BlockSpec((batch_block, T, hs), lambda b: (b, 0, 0))
        return pl.pallas_call(
            kernel,
            out_shape=out_shape,
            grid=grid,
            in_specs=[pl.BlockSpec((batch_block, T, C), lambda b: (b, 0, 0)),
                      wspec],
            out_specs=out_spec,
            compiler_params=pltpu.CompilerParams(
                dimension_semantics=("parallel",),
                vmem_limit_bytes=vmem_limit),
            cost_estimate=cost,
        )

    # Capability fallback: prefer the lane-dense output slab and the
    # single-buffered weight spec, but degrade gracefully if either is not
    # supported by the installed Mosaic lowering, so the kernel always runs.
    last_err = None
    for lane_dense, single_buf_w in ((True, True), (True, False),
                                     (False, True), (False, False)):
        try:
            out = build(lane_dense, single_buf_w)(x, wqkv)
        except Exception as e:  # lowering-capability fallback only
            last_err = e
            continue
        if lane_dense:
            out = out.reshape(B, T, hs)
        return out
    raise last_err


def _reference(x, wk, wq, wv):
    """Pure-JAX reference of the PyTorch Head forward (dropout=identity)."""
    B, T, C = x.shape
    k = x @ wk
    q = x @ wq
    v = x @ wv
    wei = q @ jnp.swapaxes(k, -1, -2) * C ** (-0.5)
    mask = jnp.tril(jnp.ones((T, T), bool))
    wei = jnp.where(mask, wei, -jnp.inf)
    wei = jax.nn.softmax(wei, axis=-1)
    return wei @ v


if __name__ == "__main__":
    B, T, C, head_size = 2, 8, 32, 8       # block_size=8, n_embd=32
    key = jax.random.PRNGKey(0)
    kx, kk, kq, kv = jax.random.split(key, 4)

    x = jax.random.normal(kx, (B, T, C), jnp.float32)
    wk = (0.1 * jax.random.normal(kk, (C, head_size))).astype(jnp.float32)
    wq = (0.1 * jax.random.normal(kq, (C, head_size))).astype(jnp.float32)
    wv = (0.1 * jax.random.normal(kv, (C, head_size))).astype(jnp.float32)

    ref = _reference(x, wk, wq, wv)

    # f32-MXU path: tight check against the pure-JAX reference.
    out_f32 = head_forward(x, wk, wq, wv, mxu_dtype=jnp.float32)
    jax.block_until_ready(out_f32)
    assert out_f32.shape == (B, T, head_size)
    assert jnp.allclose(out_f32, ref, atol=2e-3, rtol=2e-3), "f32 path mismatch"

    # Default bf16-MXU path (f32 accumulation): bf16-appropriate tolerance.
    out = head_forward(x, wk, wq, wv)
    jax.block_until_ready(out)
    assert out.shape == (B, T, head_size)
    assert jnp.allclose(out, ref, atol=3e-2, rtol=3e-2), "bf16 path mismatch"

    print("KERNEL_OK")
</pallas_src>

<mosaic_0001>
module attributes {stable_mosaic.version = 11 : i64} {
  func.func @_head_kernel(%arg0: i32, %arg1: memref<1x8x32xf32, #tpu.memory_space<vmem>>, %arg2: memref<32x24xf32, #tpu.memory_space<vmem>>, %arg3: memref<1x1x64xf32, #tpu.memory_space<vmem>>) attributes {dimension_semantics = [#tpu.dimension_semantics<parallel>], iteration_bounds = array<i64: 2>, scalar_prefetch = 0 : i64, scratch_operands = 0 : i64, tpu.core_type = #tpu.core_type<tc>, window_params = [{transform_indices = @transform_0, window_bounds = array<i64: 1, 8, 32>}, {pipeline_mode = #tpu.pipeline_mode<synchronous>, transform_indices = @transform_1, window_bounds = array<i64: 32, 24>}, {transform_indices = @transform_2, window_bounds = array<i64: 1, 1, 64>}]} {
    %c0 = arith.constant 0 : index
    %c0_0 = arith.constant 0 : index
    %c0_1 = arith.constant 0 : index
    %0 = vector.load %arg1[%c0, %c0_0, %c0_1] : memref<1x8x32xf32, #tpu.memory_space<vmem>>, vector<1x8x32xf32>
    %1 = vector.shape_cast %0 : vector<1x8x32xf32> to vector<8x32xf32>
    %c0_2 = arith.constant 0 : index
    %c0_3 = arith.constant 0 : index
    %2 = vector.load %arg2[%c0_2, %c0_3] : memref<32x24xf32, #tpu.memory_space<vmem>>, vector<32x24xf32>
    %cst = arith.constant dense<0.000000e+00> : vector<8x24xf32>
    %3 = tpu.matmul %1, %2, %cst {dimension_numbers = #tpu.dot_dimension_numbers<[1], [0], [0], [1], [0, 0, 1, 1], [], []>} : vector<8x32xf32>, vector<32x24xf32>, vector<8x24xf32> -> vector<8x24xf32>
    %4 = vector.extract_strided_slice %3 {offsets = [0, 0], sizes = [8, 8], strides = [1, 1]} : vector<8x24xf32> to vector<8x8xf32>
    %cst_4 = arith.constant 0.176776692 : f32
    %5 = vector.broadcast %cst_4 : f32 to vector<8x8xf32>
    %6 = arith.mulf %4, %5 : vector<8x8xf32>
    %7 = vector.shape_cast %6 : vector<8x8xf32> to vector<1x8x8xf32>
    %8 = vector.extract_strided_slice %3 {offsets = [0, 8], sizes = [8, 8], strides = [1, 1]} : vector<8x24xf32> to vector<8x8xf32>
    %9 = vector.shape_cast %8 : vector<8x8xf32> to vector<1x8x8xf32>
    %10 = vector.extract_strided_slice %3 {offsets = [0, 16], sizes = [8, 8], strides = [1, 1]} : vector<8x24xf32> to vector<8x8xf32>
    %11 = vector.shape_cast %10 : vector<8x8xf32> to vector<1x8x8xf32>
    %cst_5 = arith.constant dense<0.000000e+00> : vector<1x8x8xf32>
    %12 = tpu.matmul %7, %9, %cst_5 {dimension_numbers = #tpu.dot_dimension_numbers<[2], [2], [1], [1], [0, 0, 0, 1, 1, 1], [0], [0]>} : vector<1x8x8xf32>, vector<1x8x8xf32>, vector<1x8x8xf32> -> vector<1x8x8xf32>
    %13 = tpu.iota {dimensions = array<i32: 0>} : vector<8x8xi32>
    %14 = tpu.iota {dimensions = array<i32: 1>} : vector<8x8xi32>
    %15 = arith.cmpi sle, %14, %13 : vector<8x8xi32>
    %16 = vector.shape_cast %15 : vector<8x8xi1> to vector<1x8x8xi1>
    %cst_6 = arith.constant -1.000000e+30 : f32
    %17 = vector.broadcast %cst_6 : f32 to vector<1x8x8xf32>
    %18 = arith.select %16, %12, %17 : vector<1x8x8xi1>, vector<1x8x8xf32>
    %cst_7 = arith.constant dense<0xFF800000> : vector<1x8xf32>
    %19 = vector.multi_reduction <maximumf>, %18, %cst_7 [2] : vector<1x8x8xf32> to vector<1x8xf32>
    %20 = vector.shape_cast %19 : vector<1x8xf32> to vector<1x8x1xf32>
    %21 = vector.broadcast %20 : vector<1x8x1xf32> to vector<1x8x8xf32>
    %22 = arith.subf %18, %21 : vector<1x8x8xf32>
    %23 = math.exp %22 : vector<1x8x8xf32>
    %cst_8 = arith.constant dense<0.000000e+00> : vector<1x8xf32>
    %24 = vector.multi_reduction <add>, %23, %cst_8 [2] : vector<1x8x8xf32> to vector<1x8xf32>
    %25 = vector.shape_cast %24 : vector<1x8xf32> to vector<1x8x1xf32>
    %26 = tpu.reciprocal %25 {approx = true} : vector<1x8x1xf32> -> vector<1x8x1xf32>
    %27 = vector.broadcast %26 : vector<1x8x1xf32> to vector<1x8x8xf32>
    %28 = arith.mulf %23, %27 : vector<1x8x8xf32>
    %cst_9 = arith.constant dense<0.000000e+00> : vector<1x8x8xf32>
    %29 = tpu.matmul %28, %11, %cst_9 {dimension_numbers = #tpu.dot_dimension_numbers<[2], [1], [1], [2], [0, 0, 0, 1, 1, 2], [0], [0]>} : vector<1x8x8xf32>, vector<1x8x8xf32>, vector<1x8x8xf32> -> vector<1x8x8xf32>
    %30 = vector.shape_cast %29 : vector<1x8x8xf32> to vector<1x1x64xf32>
    %c0_10 = arith.constant 0 : index
    %c0_11 = arith.constant 0 : index
    %c0_12 = arith.constant 0 : index
    %31 = vector.load %arg3[%c0_10, %c0_11, %c0_12] : memref<1x1x64xf32, #tpu.memory_space<vmem>>, vector<1x1x64xf32>
    tpu.vector_store %arg3[%c0_10, %c0_11, %c0_12], %30 {strides = array<i32>} : memref<1x1x64xf32, #tpu.memory_space<vmem>>, vector<1x1x64xf32>,
    return
  }
  func.func @transform_0(%arg0: i32) -> (i32, i32, i32) {
    %c0_i32 = arith.constant 0 : i32
    %c0_i32_0 = arith.constant 0 : i32
    %c0_i32_1 = arith.constant 0 : i32
    return %arg0, %c0_i32, %c0_i32_0 : i32, i32, i32
  }
  func.func @transform_1(%arg0: i32) -> (i32, i32) {
    %c0_i32 = arith.constant 0 : i32
    %c0_i32_0 = arith.constant 0 : i32
    %c0_i32_1 = arith.constant 0 : i32
    return %c0_i32, %c0_i32_0 : i32, i32
  }
  func.func @transform_2(%arg0: i32) -> (i32, i32, i32) {
    %c0_i32 = arith.constant 0 : i32
    %c0_i32_0 = arith.constant 0 : i32
    %c0_i32_1 = arith.constant 0 : i32
    return %arg0, %c0_i32, %c0_i32_0 : i32, i32, i32
  }
}

module attributes {stable_mosaic.version = 11 : i64} {
  func.func @_head_kernel(%arg0: i32, %arg1: memref<1x8x32xf32, #tpu.memory_space<vmem>>, %arg2: memref<32x24xf32, #tpu.memory_space<vmem>>, %arg3: memref<1x1x64xf32, #tpu.memory_space<vmem>>) attributes {dimension_semantics = [#tpu.dimension_semantics<parallel>], iteration_bounds = array<i64: 2>, scalar_prefetch = 0 : i64, scratch_operands = 0 : i64, tpu.core_type = #tpu.core_type<tc>, window_params = [{transform_indices = @transform_0, window_bounds = array<i64: 1, 8, 32>}, {pipeline_mode = #tpu.pipeline_mode<synchronous>, transform_indices = @transform_1, window_bounds = array<i64: 32, 24>}, {transform_indices = @transform_2, window_bounds = array<i64: 1, 1, 64>}]} {
    %c0 = arith.constant 0 : index
    %c0_0 = arith.constant 0 : index
    %c0_1 = arith.constant 0 : index
    %0 = vector.load %arg1[%c0, %c0_0, %c0_1] : memref<1x8x32xf32, #tpu.memory_space<vmem>>, vector<1x8x32xf32>
    %1 = vector.shape_cast %0 : vector<1x8x32xf32> to vector<8x32xf32>
    %c0_2 = arith.constant 0 : index
    %c0_3 = arith.constant 0 : index
    %2 = vector.load %arg2[%c0_2, %c0_3] : memref<32x24xf32, #tpu.memory_space<vmem>>, vector<32x24xf32>
    %cst = arith.constant dense<0.000000e+00> : vector<8x24xf32>
    %3 = tpu.matmul %1, %2, %cst {dimension_numbers = #tpu.dot_dimension_numbers<[1], [0], [0], [1], [0, 0, 1, 1], [], []>} : vector<8x32xf32>, vector<32x24xf32>, vector<8x24xf32> -> vector<8x24xf32>
    %4 = vector.extract_strided_slice %3 {offsets = [0, 0], sizes = [8, 8], strides = [1, 1]} : vector<8x24xf32> to vector<8x8xf32>
    %cst_4 = arith.constant 0.176776692 : f32
    %5 = vector.broadcast %cst_4 : f32 to vector<8x8xf32>
    %6 = arith.mulf %4, %5 : vector<8x8xf32>
    %7 = vector.shape_cast %6 : vector<8x8xf32> to vector<1x8x8xf32>
    %8 = vector.extract_strided_slice %3 {offsets = [0, 8], sizes = [8, 8], strides = [1, 1]} : vector<8x24xf32> to vector<8x8xf32>
    %9 = vector.shape_cast %8 : vector<8x8xf32> to vector<1x8x8xf32>
    %10 = vector.extract_strided_slice %3 {offsets = [0, 16], sizes = [8, 8], strides = [1, 1]} : vector<8x24xf32> to vector<8x8xf32>
    %11 = vector.shape_cast %10 : vector<8x8xf32> to vector<1x8x8xf32>
    %cst_5 = arith.constant dense<0.000000e+00> : vector<1x8x8xf32>
    %12 = tpu.matmul %7, %9, %cst_5 {dimension_numbers = #tpu.dot_dimension_numbers<[2], [2], [1], [1], [0, 0, 0, 1, 1, 1], [0], [0]>} : vector<1x8x8xf32>, vector<1x8x8xf32>, vector<1x8x8xf32> -> vector<1x8x8xf32>
    %13 = tpu.iota {dimensions = array<i32: 0>} : vector<8x8xi32>
    %14 = tpu.iota {dimensions = array<i32: 1>} : vector<8x8xi32>
    %15 = arith.cmpi sle, %14, %13 : vector<8x8xi32>
    %16 = vector.shape_cast %15 : vector<8x8xi1> to vector<1x8x8xi1>
    %cst_6 = arith.constant -1.000000e+30 : f32
    %17 = vector.broadcast %cst_6 : f32 to vector<1x8x8xf32>
    %18 = arith.select %16, %12, %17 : vector<1x8x8xi1>, vector<1x8x8xf32>
    %cst_7 = arith.constant dense<0xFF800000> : vector<1x8xf32>
    %19 = vector.multi_reduction <maximumf>, %18, %cst_7 [2] : vector<1x8x8xf32> to vector<1x8xf32>
    %20 = vector.shape_cast %19 : vector<1x8xf32> to vector<1x8x1xf32>
    %21 = vector.broadcast %20 : vector<1x8x1xf32> to vector<1x8x8xf32>
    %22 = arith.subf %18, %21 : vector<1x8x8xf32>
    %23 = math.exp %22 : vector<1x8x8xf32>
    %cst_8 = arith.constant dense<0.000000e+00> : vector<1x8xf32>
    %24 = vector.multi_reduction <add>, %23, %cst_8 [2] : vector<1x8x8xf32> to vector<1x8xf32>
    %25 = vector.shape_cast %24 : vector<1x8xf32> to vector<1x8x1xf32>
    %26 = tpu.reciprocal %25 {approx = true} : vector<1x8x1xf32> -> vector<1x8x1xf32>
    %27 = vector.broadcast %26 : vector<1x8x1xf32> to vector<1x8x8xf32>
    %28 = arith.mulf %23, %27 : vector<1x8x8xf32>
    %cst_9 = arith.constant dense<0.000000e+00> : vector<1x8x8xf32>
    %29 = tpu.matmul %28, %11, %cst_9 {dimension_numbers = #tpu.dot_dimension_numbers<[2], [1], [1], [2], [0, 0, 0, 1, 1, 2], [0], [0]>} : vector<1x8x8xf32>, vector<1x8x8xf32>, vector<1x8x8xf32> -> vector<1x8x8xf32>
    %30 = vector.shape_cast %29 : vector<1x8x8xf32> to vector<1x1x64xf32>
    %c0_10 = arith.constant 0 : index
    %c0_11 = arith.constant 0 : index
    %c0_12 = arith.constant 0 : index
    %31 = vector.load %arg3[%c0_10, %c0_11, %c0_12] : memref<1x1x64xf32, #tpu.memory_space<vmem>>, vector<1x1x64xf32>
    tpu.vector_store %arg3[%c0_10, %c0_11, %c0_12], %30 {strides = array<i32>} : memref<1x1x64xf32, #tpu.memory_space<vmem>>, vector<1x1x64xf32>,
    return
  }
  func.func @transform_0(%arg0: i32) -> (i32, i32, i32) {
    %c0_i32 = arith.constant 0 : i32
    %c0_i32_0 = arith.constant 0 : i32
    %c0_i32_1 = arith.constant 0 : i32
    return %arg0, %c0_i32, %c0_i32_0 : i32, i32, i32
  }
  func.func @transform_1(%arg0: i32) -> (i32, i32) {
    %c0_i32 = arith.constant 0 : i32
    %c0_i32_0 = arith.constant 0 : i32
    %c0_i32_1 = arith.constant 0 : i32
    return %c0_i32, %c0_i32_0 : i32, i32
  }
  func.func @transform_2(%arg0: i32) -> (i32, i32, i32) {
    %c0_i32 = arith.constant 0 : i32
    %c0_i32_0 = arith.constant 0 : i32
    %c0_i32_1 = arith.constant 0 : i32
    return %arg0, %c0_i32, %c0_i32_0 : i32, i32, i32
  }
}

module attributes {stable_mosaic.version = 11 : i64} {
  func.func @_head_kernel(%arg0: i32, %arg1: memref<1x8x32xf32, #tpu.memory_space<vmem>>, %arg2: memref<32x24xf32, #tpu.memory_space<vmem>>, %arg3: memref<1x8x8xf32, #tpu.memory_space<vmem>>) attributes {dimension_semantics = [#tpu.dimension_semantics<parallel>], iteration_bounds = array<i64: 2>, scalar_prefetch = 0 : i64, scratch_operands = 0 : i64, tpu.core_type = #tpu.core_type<tc>, window_params = [{transform_indices = @transform_0, window_bounds = array<i64: 1, 8, 32>}, {pipeline_mode = #tpu.pipeline_mode<synchronous>, transform_indices = @transform_1, window_bounds = array<i64: 32, 24>}, {transform_indices = @transform_2, window_bounds = array<i64: 1, 8, 8>}]} {
    %c0 = arith.constant 0 : index
    %c0_0 = arith.constant 0 : index
    %c0_1 = arith.constant 0 : index
    %0 = vector.load %arg1[%c0, %c0_0, %c0_1] : memref<1x8x32xf32, #tpu.memory_space<vmem>>, vector<1x8x32xf32>
    %1 = vector.shape_cast %0 : vector<1x8x32xf32> to vector<8x32xf32>
    %c0_2 = arith.constant 0 : index
    %c0_3 = arith.constant 0 : index
    %2 = vector.load %arg2[%c0_2, %c0_3] : memref<32x24xf32, #tpu.memory_space<vmem>>, vector<32x24xf32>
    %cst = arith.constant dense<0.000000e+00> : vector<8x24xf32>
    %3 = tpu.matmul %1, %2, %cst {dimension_numbers = #tpu.dot_dimension_numbers<[1], [0], [0], [1], [0, 0, 1, 1], [], []>} : vector<8x32xf32>, vector<32x24xf32>, vector<8x24xf32> -> vector<8x24xf32>
    %4 = vector.extract_strided_slice %3 {offsets = [0, 0], sizes = [8, 8], strides = [1, 1]} : vector<8x24xf32> to vector<8x8xf32>
    %cst_4 = arith.constant 0.176776692 : f32
    %5 = vector.broadcast %cst_4 : f32 to vector<8x8xf32>
    %6 = arith.mulf %4, %5 : vector<8x8xf32>
    %7 = vector.shape_cast %6 : vector<8x8xf32> to vector<1x8x8xf32>
    %8 = vector.extract_strided_slice %3 {offsets = [0, 8], sizes = [8, 8], strides = [1, 1]} : vector<8x24xf32> to vector<8x8xf32>
    %9 = vector.shape_cast %8 : vector<8x8xf32> to vector<1x8x8xf32>
    %10 = vector.extract_strided_slice %3 {offsets = [0, 16], sizes = [8, 8], strides = [1, 1]} : vector<8x24xf32> to vector<8x8xf32>
    %11 = vector.shape_cast %10 : vector<8x8xf32> to vector<1x8x8xf32>
    %cst_5 = arith.constant dense<0.000000e+00> : vector<1x8x8xf32>
    %12 = tpu.matmul %7, %9, %cst_5 {dimension_numbers = #tpu.dot_dimension_numbers<[2], [2], [1], [1], [0, 0, 0, 1, 1, 1], [0], [0]>} : vector<1x8x8xf32>, vector<1x8x8xf32>, vector<1x8x8xf32> -> vector<1x8x8xf32>
    %13 = tpu.iota {dimensions = array<i32: 0>} : vector<8x8xi32>
    %14 = tpu.iota {dimensions = array<i32: 1>} : vector<8x8xi32>
    %15 = arith.cmpi sle, %14, %13 : vector<8x8xi32>
    %16 = vector.shape_cast %15 : vector<8x8xi1> to vector<1x8x8xi1>
    %cst_6 = arith.constant -1.000000e+30 : f32
    %17 = vector.broadcast %cst_6 : f32 to vector<1x8x8xf32>
    %18 = arith.select %16, %12, %17 : vector<1x8x8xi1>, vector<1x8x8xf32>
    %cst_7 = arith.constant dense<0xFF800000> : vector<1x8xf32>
    %19 = vector.multi_reduction <maximumf>, %18, %cst_7 [2] : vector<1x8x8xf32> to vector<1x8xf32>
    %20 = vector.shape_cast %19 : vector<1x8xf32> to vector<1x8x1xf32>
    %21 = vector.broadcast %20 : vector<1x8x1xf32> to vector<1x8x8xf32>
    %22 = arith.subf %18, %21 : vector<1x8x8xf32>
    %23 = math.exp %22 : vector<1x8x8xf32>
    %cst_8 = arith.constant dense<0.000000e+00> : vector<1x8xf32>
    %24 = vector.multi_reduction <add>, %23, %cst_8 [2] : vector<1x8x8xf32> to vector<1x8xf32>
    %25 = vector.shape_cast %24 : vector<1x8xf32> to vector<1x8x1xf32>
    %26 = tpu.reciprocal %25 {approx = true} : vector<1x8x1xf32> -> vector<1x8x1xf32>
    %27 = vector.broadcast %26 : vector<1x8x1xf32> to vector<1x8x8xf32>
    %28 = arith.mulf %23, %27 : vector<1x8x8xf32>
    %cst_9 = arith.constant dense<0.000000e+00> : vector<1x8x8xf32>
    %29 = tpu.matmul %28, %11, %cst_9 {dimension_numbers = #tpu.dot_dimension_numbers<[2], [1], [1], [2], [0, 0, 0, 1, 1, 2], [0], [0]>} : vector<1x8x8xf32>, vector<1x8x8xf32>, vector<1x8x8xf32> -> vector<1x8x8xf32>
    %c0_10 = arith.constant 0 : index
    %c0_11 = arith.constant 0 : index
    %c0_12 = arith.constant 0 : index
    %30 = vector.load %arg3[%c0_10, %c0_11, %c0_12] : memref<1x8x8xf32, #tpu.memory_space<vmem>>, vector<1x8x8xf32>
    tpu.vector_store %arg3[%c0_10, %c0_11, %c0_12], %29 {strides = array<i32>} : memref<1x8x8xf32, #tpu.memory_space<vmem>>, vector<1x8x8xf32>,
    return
  }
  func.func @transform_0(%arg0: i32) -> (i32, i32, i32) {
    %c0_i32 = arith.constant 0 : i32
    %c0_i32_0 = arith.constant 0 : i32
    %c0_i32_1 = arith.constant 0 : i32
    return %arg0, %c0_i32, %c0_i32_0 : i32, i32, i32
  }
  func.func @transform_1(%arg0: i32) -> (i32, i32) {
    %c0_i32 = arith.constant 0 : i32
    %c0_i32_0 = arith.constant 0 : i32
    %c0_i32_1 = arith.constant 0 : i32
    return %c0_i32, %c0_i32_0 : i32, i32
  }
  func.func @transform_2(%arg0: i32) -> (i32, i32, i32) {
    %c0_i32 = arith.constant 0 : i32
    %c0_i32_0 = arith.constant 0 : i32
    %c0_i32_1 = arith.constant 0 : i32
    return %arg0, %c0_i32, %c0_i32_0 : i32, i32, i32
  }
}

module attributes {stable_mosaic.version = 11 : i64} {
  func.func @_head_kernel(%arg0: i32, %arg1: memref<1x8x32xf32, #tpu.memory_space<vmem>>, %arg2: memref<32x24xf32, #tpu.memory_space<vmem>>, %arg3: memref<1x8x8xf32, #tpu.memory_space<vmem>>) attributes {dimension_semantics = [#tpu.dimension_semantics<parallel>], iteration_bounds = array<i64: 2>, scalar_prefetch = 0 : i64, scratch_operands = 0 : i64, tpu.core_type = #tpu.core_type<tc>, window_params = [{transform_indices = @transform_0, window_bounds = array<i64: 1, 8, 32>}, {pipeline_mode = #tpu.pipeline_mode<synchronous>, transform_indices = @transform_1, window_bounds = array<i64: 32, 24>}, {transform_indices = @transform_2, window_bounds = array<i64: 1, 8, 8>}]} {
    %c0 = arith.constant 0 : index
    %c0_0 = arith.constant 0 : index
    %c0_1 = arith.constant 0 : index
    %0 = vector.load %arg1[%c0, %c0_0, %c0_1] : memref<1x8x32xf32, #tpu.memory_space<vmem>>, vector<1x8x32xf32>
    %1 = vector.shape_cast %0 : vector<1x8x32xf32> to vector<8x32xf32>
    %c0_2 = arith.constant 0 : index
    %c0_3 = arith.constant 0 : index
    %2 = vector.load %arg2[%c0_2, %c0_3] : memref<32x24xf32, #tpu.memory_space<vmem>>, vector<32x24xf32>
    %cst = arith.constant dense<0.000000e+00> : vector<8x24xf32>
    %3 = tpu.matmul %1, %2, %cst {dimension_numbers = #tpu.dot_dimension_numbers<[1], [0], [0], [1], [0, 0, 1, 1], [], []>} : vector<8x32xf32>, vector<32x24xf32>, vector<8x24xf32> -> vector<8x24xf32>
    %4 = vector.extract_strided_slice %3 {offsets = [0, 0], sizes = [8, 8], strides = [1, 1]} : vector<8x24xf32> to vector<8x8xf32>
    %cst_4 = arith.constant 0.176776692 : f32
    %5 = vector.broadcast %cst_4 : f32 to vector<8x8xf32>
    %6 = arith.mulf %4, %5 : vector<8x8xf32>
    %7 = vector.shape_cast %6 : vector<8x8xf32> to vector<1x8x8xf32>
    %8 = vector.extract_strided_slice %3 {offsets = [0, 8], sizes = [8, 8], strides = [1, 1]} : vector<8x24xf32> to vector<8x8xf32>
    %9 = vector.shape_cast %8 : vector<8x8xf32> to vector<1x8x8xf32>
    %10 = vector.extract_strided_slice %3 {offsets = [0, 16], sizes = [8, 8], strides = [1, 1]} : vector<8x24xf32> to vector<8x8xf32>
    %11 = vector.shape_cast %10 : vector<8x8xf32> to vector<1x8x8xf32>
    %cst_5 = arith.constant dense<0.000000e+00> : vector<1x8x8xf32>
    %12 = tpu.matmul %7, %9, %cst_5 {dimension_numbers = #tpu.dot_dimension_numbers<[2], [2], [1], [1], [0, 0, 0, 1, 1, 1], [0], [0]>} : vector<1x8x8xf32>, vector<1x8x8xf32>, vector<1x8x8xf32> -> vector<1x8x8xf32>
    %13 = tpu.iota {dimensions = array<i32: 0>} : vector<8x8xi32>
    %14 = tpu.iota {dimensions = array<i32: 1>} : vector<8x8xi32>
    %15 = arith.cmpi sle, %14, %13 : vector<8x8xi32>
    %16 = vector.shape_cast %15 : vector<8x8xi1> to vector<1x8x8xi1>
    %cst_6 = arith.constant -1.000000e+30 : f32
    %17 = vector.broadcast %cst_6 : f32 to vector<1x8x8xf32>
    %18 = arith.select %16, %12, %17 : vector<1x8x8xi1>, vector<1x8x8xf32>
    %cst_7 = arith.constant dense<0xFF800000> : vector<1x8xf32>
    %19 = vector.multi_reduction <maximumf>, %18, %cst_7 [2] : vector<1x8x8xf32> to vector<1x8xf32>
    %20 = vector.shape_cast %19 : vector<1x8xf32> to vector<1x8x1xf32>
    %21 = vector.broadcast %20 : vector<1x8x1xf32> to vector<1x8x8xf32>
    %22 = arith.subf %18, %21 : vector<1x8x8xf32>
    %23 = math.exp %22 : vector<1x8x8xf32>
    %cst_8 = arith.constant dense<0.000000e+00> : vector<1x8xf32>
    %24 = vector.multi_reduction <add>, %23, %cst_8 [2] : vector<1x8x8xf32> to vector<1x8xf32>
    %25 = vector.shape_cast %24 : vector<1x8xf32> to vector<1x8x1xf32>
    %26 = tpu.reciprocal %25 {approx = true} : vector<1x8x1xf32> -> vector<1x8x1xf32>
    %27 = vector.broadcast %26 : vector<1x8x1xf32> to vector<1x8x8xf32>
    %28 = arith.mulf %23, %27 : vector<1x8x8xf32>
    %cst_9 = arith.constant dense<0.000000e+00> : vector<1x8x8xf32>
    %29 = tpu.matmul %28, %11, %cst_9 {dimension_numbers = #tpu.dot_dimension_numbers<[2], [1], [1], [2], [0, 0, 0, 1, 1, 2], [0], [0]>} : vector<1x8x8xf32>, vector<1x8x8xf32>, vector<1x8x8xf32> -> vector<1x8x8xf32>
    %c0_10 = arith.constant 0 : index
    %c0_11 = arith.constant 0 : index
    %c0_12 = arith.constant 0 : index
    %30 = vector.load %arg3[%c0_10, %c0_11, %c0_12] : memref<1x8x8xf32, #tpu.memory_space<vmem>>, vector<1x8x8xf32>
    tpu.vector_store %arg3[%c0_10, %c0_11, %c0_12], %29 {strides = array<i32>} : memref<1x8x8xf32, #tpu.memory_space<vmem>>, vector<1x8x8xf32>,
    return
  }
  func.func @transform_0(%arg0: i32) -> (i32, i32, i32) {
    %c0_i32 = arith.constant 0 : i32
    %c0_i32_0 = arith.constant 0 : i32
    %c0_i32_1 = arith.constant 0 : i32
    return %arg0, %c0_i32, %c0_i32_0 : i32, i32, i32
  }
  func.func @transform_1(%arg0: i32) -> (i32, i32) {
    %c0_i32 = arith.constant 0 : i32
    %c0_i32_0 = arith.constant 0 : i32
    %c0_i32_1 = arith.constant 0 : i32
    return %c0_i32, %c0_i32_0 : i32, i32
  }
  func.func @transform_2(%arg0: i32) -> (i32, i32, i32) {
    %c0_i32 = arith.constant 0 : i32
    %c0_i32_0 = arith.constant 0 : i32
    %c0_i32_1 = arith.constant 0 : i32
    return %arg0, %c0_i32, %c0_i32_0 : i32, i32, i32
  }
}

</mosaic_0001>

<bundles_post_ra>
// kernel: tpu_custom_call.1
= control target key start
LH: loop header
LB: loop body
LE: loop exit
PB: predicated region body
PF: predicated region fallthrough
CT: control target
= control target key end

     0   :  { %7 = vsyncpa [#allocation3], 0  ;;  %s656_s0 = inlined_call_operand.vmem [shape: f32[2,8,32], index: 0, kind: input, shape index: {}]   ;;  %s657_s1 = inlined_call_operand.vmem [shape: f32[32,24], index: 1, kind: input, shape index: {}]   ;;  %s658_s2 = inlined_call_operand.hbm [shape: f32[2,1,64], index: 2, kind: output, shape index: {}]  }
   0x1   :  { %9 = vsyncpa [#allocation3 + $0x1], 0  ;;  %s544_s9 = smov 0   ;;  %s546_s10 = smov 0  }
   0x2   :  { %s548_s11 = smov 0   ;;  %s550_s12 = smov 0  }
   0x3 LB: > { %s565_s13 = sadd.s32 4294967295, %s516_s12   ;;  %s389_s14 = sadd.s32 4294967294, %s516_s12   ;;  %s516_s12 = sphi %s550_s12, %s664_s12   ;;  %s512_s11 = sphi %s548_s11, %s663_s11   ;;  %s508_s10 = sphi %s546_s10, %s662_s10   ;;  %s504_s9 = sphi %s544_s9, %s661_s9  }
   0x4   : > { %s569_s15 = sadd.s32 1, %s516_s12   ;;  %s69_s16 = sadd.s32 1, %s512_s11 }
   0x5   : > { %s66_s17 = ssub.s32 %s516_s12, %s569_s15  ;;  %p79_p0 = scmp.ne.s32.totalorder %s512_s11, %s508_s10 }
   0x6   : > { %p67_p1 = scmp.eq.s32.totalorder %s66_s17, 0  ;;  %p80_p2 = scmp.eq.s32.totalorder %s565_s13, 1 }
   0x7   : > { %p85_p3 = scmp.ne.s32.totalorder %s508_s10, %s504_s9  ;;  %p86_p4 = scmp.eq.s32.totalorder %s389_s14, 1 }
   0x8   : > { %s580_s18 = scalar_select %p67_p1, %s512_s11, %s69_s16  }
   0x9   : > { %p582_p5 = por %p80_p2, %p79_p0  ;;  %p586_p6 = por %p86_p4, %p85_p3 }
   0xa   : > { %p392_p7 = scmp.ge.s32.totalorder %s516_s12, 1  ;;  %p114_p8 = scmp.lt.s32.totalorder %s516_s12, 3 }
   0xc   : > { %p115_p9 = pnand %p392_p7, %p114_p8 }
   0xd   : > { %p134_p10 = scmp.lt.s32.totalorder (!%p115_p9), %s565_s13, 1  ;;  %s518_s6 = smov (!%p115_p9), 120  }
   0xe   : > { %118 = sbr.rel (%p115_p9) target bundleno = 942 (0x3ae), region = 28  ;;  %s519_s7 = smov (!%p115_p9), 112  }
   0xf   : > { %s522_s8 = smov (!%p115_p9), 8   ;;  %s523_s14 = smov (!%p115_p9), 48  }
  0x10   : > { %s524_s16 = smov (!%p115_p9), 16   ;;  %s525_s17 = smov (!%p115_p9), 32  }
  0x11   : > { %s526_s21 = smov (!%p115_p9), 24   ;;  %s527_s22 = smov (!%p115_p9), 40  }
  0x12   : > { %s528_s23 = smov (!%p115_p9), 56   ;;  %s132_s24 = sand.u32 (!%p115_p9), 1, %s508_s10  }
  0x13   : > { %v142_v0 = vld [vmem:[%s657_s1 + $0x18] sm:$0xff]  ;;  %v141_v1 = vld [vmem:[%s657_s1 + $0x10] sm:$0xff]  ;;  %v140_v2 = vld [vmem:[%s657_s1 + $0x8] sm:$0xff]  ;;  %s135_s27 = scalar_select %p134_p10, %s565_s13, 1  ;;  %vm143_vm0 = vcmask 261120   ;;  %vm171_vm1 = vcmask 64512   ;;  %v197_v8 = vlaneseq }
  0x14   : > { %159 = vmatpush.msra.mxu0 %v142_v0  ;;  %v139_v3 = vld [vmem:[%s657_s1] sm:$0xff]  ;;  %v520_v23 = vmov 1983009808   ;;  %v521_v25 = vmov 1934713408   ;;  %vm241_vm3 = vcmask 1047556  }
  0x15   : > { %s393_s30 = sshll.u32 %s135_s27, 3  ;;  %v198_v9 = vshrl.u32 %v197_v8, 7  ;;  %v200_v10 = vand.u32 127, %v197_v8  ;;  %v244_v24 = vunpack.c.l.s4 %v520_v23  ;;  %v254_v26 = vunpack.c.l.s4 %v521_v25  ;;  %s330_s27 = scalar_lea.hbm %s658_s2, %s565_s13 }
  0x16   : > { %160 = vmatpush.msra.mxu0 %v141_v1  ;;  %s137_s5 = scalar_lea.vmem %s656_s0, %s393_s30  ;;  %vm308_vm4 = vcmask 130048   ;;  %vm310_vm5 = vcmask 195584   ;;  %vm313_vm6 = vcmask 326656   ;;  %vm315_vm7 = vcmask 392192   ;;  %s133_s28 = scalar_lea.vmem [#allocation2], %s132_s24 }
  0x17   : > { %v138_v4 = vld [vmem:[%s137_s5] sm:$0xff]  ;;  %vm201_vm2 = vcmp.le.s32.totalorder %v200_v10, %v198_v9  ;;  %v245_v27 = vunpack.c.0.s8 %v244_v24  ;;  %v255_v28 = vunpack.c.0.s8 %v254_v26  ;;  %s332_s29 = sshll.u32 %s133_s28, 4  ;;  %s334_s30 = sshll.u32 %s330_s27, 4  ;;  %vm317_vm8 = vcmask 457728   ;;  %s333_s29 = int_to_ptr.vmem [resolvable:$true] %s332_s29  ;;  %s335_s30 = int_to_ptr.hbm [resolvable:$true] %s334_s30 }
  0x18   : > { %161 = vmatpush.msra.mxu0 %v140_v2  ;;  %vm319_vm9 = vcmask 516096   ;;  %s322_s3 = scalar_lea.sflag [#allocation3], %s132_s24  ;;  %s468_s4 = sshra.s32 %s335_s30, 4  ;;  %s469_s4 = int_to_ptr.hbm [resolvable:$true] %s468_s4 }
  0x19   : > { %s470_s13 = scalar_lea.hbm %s469_s4, 1  ;;  %p475_p0 = scmp.lt.s32.totalorder %s469_s4, %s658_s2 }
  0x1a   : > { %162 = vmatpush.msra.mxu0 %v139_v3  ;;  %p471_p11 = scmp.ne.s32.totalorder %s469_s4, %s470_s13 }
  0x1b   : > { %394 = vmatmul.msk.f32.vlgmr.msra.gmra.mxu0 %vm143_vm0, %v138_v4 }
  0x1c   : > { %p472_p12 = pnand %p471_p11, %p582_p5 }
  0x1e   : > { %p473_p13 = pneg %p472_p12 }
  0x98   : > { %v164_v5 = vpop.f32.mrf.mxu0 }
  0x99   : > { %169 = vrot.lane.b32.xlu0 %v164_v5, %s518_s6  ;;  %v167_v7 = vmul.f32 0.17677669, %v164_v5 }
 0x10b   : > { %v170_v6 = vpop.permute.xlu0 %169 }
 0x10c   : > { %395 = vmatpush.xpose.msk.msra.mxu1 %vm171_vm1, %v170_v6 }
 0x10f   : > { %396 = vmatmul.msk.f32.vlgmr.msra.gmra.mxu1 %vm171_vm1, %v167_v7 }
 0x18c   : > { %v194_v11 = vpop.f32.mrf.mxu1 }
 0x18d   : > { %v202_v12 = vsel %vm201_vm2, %v194_v11, -1e+30 }
 0x18e   : > { %v203_v13 = vsel %vm171_vm1, %v202_v12, -inf }
 0x18f   : > { %204 = vmax.xlane.f32.xlu0 %v203_v13 }
 0x202   : > { %v205_v14 = vpop.xlane.xlu0 %204 }
 0x203   : > { %v206_v15 = vsub.f32 %v202_v12, %v205_v14 }
 0x205   : > { %v207_v16 = vmul.f32 1.442695, %v206_v15 }
 0x207   : > { %450 = vpow2.f32 %v207_v16 }
 0x20d   : > { %v451_v17 = vpop.eup %450 }
 0x20e   : > { %v209_v18 = vsel %vm171_vm1, %v451_v17, 0.0 }
 0x20f   : > { %210 = vadd.xlane.f32.xlu1 %v209_v18 }
 0x228   : > { %214 = vrot.lane.b32.xlu1 %v164_v5, %s519_s7  ;;  %s474_s7 = scalar_lea.hbm %s658_s2, 2 }
 0x229   : > { %p476_p1 = scmp.lt.s32.totalorder %s474_s7, %s470_s13 }
 0x22b   : > { %p477_p2 = por %p476_p1, %p475_p0 }
 0x22d   : > { %p478_p3 = pnand %p477_p2, %p473_p13 }
 0x282   : > { %v211_v19 = vpop.xlane.xlu1 %210 }
 0x283   : > { %452 = vrcp.f32 %v211_v19 }
 0x289   : > { %v453_v20 = vpop.eup %452 }
 0x28a   : > { %v213_v22 = vmul.f32 %v453_v20, %v451_v17 }
 0x29a   : > { %v215_v21 = vpop.permute.xlu1 %214 }
 0x29b   : > { %235 = vmatpush.msra.mxu2 %v215_v21 }
 0x29c   : > { %397 = vmatmul.msk.f32.vlgmr.msra.gmra.mxu2 %vm171_vm1, %v213_v22 }
 0x31f   : > { %v237_v29 = vpop.f32.mrf.mxu2 }
 0x320   : > { %v240_v30 = vrot.slane %v237_v29, 4  ;;  %v246_v31 = vperm.slane %v237_v29, %v245_v27 }
 0x322   : > { %v242_v32 = vsel %vm241_vm3, 0.0, %v240_v30  ;;  %v256_v33 = vperm.slane %v246_v31, %v255_v28  ;;  %v251_v37 = vrot.slane %v246_v31, 4 }
 0x323   : > { %v250_v34 = vperm.slane %v242_v32, %v245_v27 }
 0x324   : > { %v271_v35 = vrot.slane %v256_v33, 4  ;;  %v252_v41 = vsel %vm241_vm3, 0.0, %v251_v37 }
 0x325   : > { %v261_v36 = vrot.slane %v250_v34, 4  ;;  %v260_v42 = vperm.slane %v252_v41, %v255_v28  ;;  %v266_v43 = vperm.slane %v250_v34, %v255_v28 }
 0x326   : > { %v272_v38 = vsel %vm241_vm3, 0.0, %v271_v35 }
 0x327   : > { %280 = vrot.lane.b32.xlu2 %v272_v38, %s522_s8  ;;  %v262_v39 = vsel %vm241_vm3, 0.0, %v261_v36  ;;  %v273_v44 = vrot.slane %v260_v42, 4  ;;  %v275_v46 = vrot.slane %v266_v43, 4 }
 0x328   : > { %v270_v40 = vperm.slane %v262_v39, %v255_v28 }
 0x329   : > { %v274_v45 = vsel %vm241_vm3, 0.0, %v273_v44  ;;  %v276_v47 = vsel %vm241_vm3, 0.0, %v275_v46 }
 0x32a   : > { %300 = vrot.lane.b32.xlu1 %v270_v40, %s523_s14  ;;  %v277_v48 = vrot.slane %v270_v40, 4 }
 0x32c   : > { %v278_v49 = vsel %vm241_vm3, 0.0, %v277_v48 }
 0x32f   : > { %284 = vrot.lane.b32.xlu2 %v260_v42, %s524_s16 }
 0x337   : > { %292 = vrot.lane.b32.xlu2 %v266_v43, %s525_s17 }
 0x33f   : > { %288 = vrot.lane.b32.xlu2 %v274_v45, %s526_s21 }
 0x347   : > { %296 = vrot.lane.b32.xlu2 %v276_v47, %s527_s22 }
 0x34f   : > { %304 = vrot.lane.b32.xlu2 %v278_v49, %s528_s23 }
 0x381   : > { %v281_v50 = vpop.permute.xlu2 %280 }
 0x382   : > { %v307_v54 = vsel %vm171_vm1, %v256_v33, %v281_v50 }
 0x389   : > { %v285_v51 = vpop.permute.xlu2 %284 }
 0x38a   : > { %v309_v55 = vsel %vm308_vm4, %v307_v54, %v285_v51 }
 0x391   : > { %v293_v52 = vpop.permute.xlu2 %292 }
 0x399   : > { %v289_v53 = vpop.permute.xlu2 %288 }
 0x39a   : > { %v311_v57 = vsel %vm310_vm5, %v309_v55, %v289_v53 }
 0x39b   : > { %v312_v58 = vsel %vm143_vm0, %v311_v57, %v293_v52 }
 0x39c   : > { %v301_v60 = vpop.permute.xlu1 %300 }
 0x3a1   : > { %v297_v56 = vpop.permute.xlu2 %296 }
 0x3a2   : > { %v314_v59 = vsel %vm313_vm6, %v312_v58, %v297_v56 }
 0x3a3   : > { %v316_v61 = vsel %vm315_vm7, %v314_v59, %v301_v60 }
 0x3a9   : > { %v305_v62 = vpop.permute.xlu2 %304 }
 0x3aa   : > { %v318_v63 = vsel %vm317_vm8, %v316_v61, %v305_v62 }
 0x3ab   : > { %320 = vst.msk [vmem:[%s133_s28] sm:$0x1] %vm319_vm9, %v318_v63 }
 0x3ac   : > { %481 = shalt.err (!%p478_p3)
}
 0x3ad   : > { %400 = dma.vmem_to_hbm [thread:$0]  (%p582_p5), %s333_s29, 16, %s335_s30, %s322_s3  }
 0x3ae PF: > { %p406_p4 = scmp.ge.s32.totalorder %s516_s12, 2  ;;  %s346_s16 = sand.u32 1, %s504_s9  }
 0x3af   : > { %s347_s17 = scalar_lea.sflag [#allocation3], %s346_s16 }
 0x3b0   : > { %p403_p7 = pnand %p406_p4, %p586_p6 }
 0x3b2   : > { %p404_p8 = pneg %p403_p7 }
 0x3b4   : > { %499 = dma.done.wait (%p404_p8), %s347_s17, 16  }
 0x3b5   : > { %501 = vsyncadd (%p404_p8), %s347_s17, 4294967280  ;;  %p12_p9 = scmp.ge.s32.totalorder %s569_s15, 4   ;;  %s661_s9 = smov %s508_s10 }
 0x3b6   : > { %s662_s10 = smov %s512_s11  ;;  %s663_s11 = smov %s580_s18 }
 0x3b7   : > { %s664_s12 = smov %s569_s15  ;;  %14 = sbr.rel (!%p12_p9) target bundleno = 3 (0x3), region = 63 }
 0x3bc   :  { %352 = vsyncpa [#allocation3], 1 }
 0x3bd   :  { %354 = vsyncpa [#allocation3 + $0x1], 1 }

// kernel: tpu_custom_call.1
= control target key start
LH: loop header
LB: loop body
LE: loop exit
PB: predicated region body
PF: predicated region fallthrough
CT: control target
= control target key end

     0   :  { %7 = vsyncpa [#allocation3], 0  ;;  %s656_s0 = inlined_call_operand.vmem [shape: f32[2,8,32], index: 0, kind: input, shape index: {}]   ;;  %s657_s1 = inlined_call_operand.vmem [shape: f32[32,24], index: 1, kind: input, shape index: {}]   ;;  %s658_s2 = inlined_call_operand.hbm [shape: f32[2,1,64], index: 2, kind: output, shape index: {}]  }
   0x1   :  { %9 = vsyncpa [#allocation3 + $0x1], 0  ;;  %s544_s9 = smov 0   ;;  %s546_s10 = smov 0  }
   0x2   :  { %s548_s11 = smov 0   ;;  %s550_s12 = smov 0  }
   0x3 LB: > { %s565_s13 = sadd.s32 4294967295, %s516_s12   ;;  %s389_s14 = sadd.s32 4294967294, %s516_s12   ;;  %s516_s12 = sphi %s550_s12, %s664_s12   ;;  %s512_s11 = sphi %s548_s11, %s663_s11   ;;  %s508_s10 = sphi %s546_s10, %s662_s10   ;;  %s504_s9 = sphi %s544_s9, %s661_s9  }
   0x4   : > { %s569_s15 = sadd.s32 1, %s516_s12   ;;  %s69_s16 = sadd.s32 1, %s512_s11 }
   0x5   : > { %s66_s17 = ssub.s32 %s516_s12, %s569_s15  ;;  %p79_p0 = scmp.ne.s32.totalorder %s512_s11, %s508_s10 }
   0x6   : > { %p67_p1 = scmp.eq.s32.totalorder %s66_s17, 0  ;;  %p80_p2 = scmp.eq.s32.totalorder %s565_s13, 1 }
   0x7   : > { %p85_p3 = scmp.ne.s32.totalorder %s508_s10, %s504_s9  ;;  %p86_p4 = scmp.eq.s32.totalorder %s389_s14, 1 }
   0x8   : > { %s580_s18 = scalar_select %p67_p1, %s512_s11, %s69_s16  }
   0x9   : > { %p582_p5 = por %p80_p2, %p79_p0  ;;  %p586_p6 = por %p86_p4, %p85_p3 }
   0xa   : > { %p392_p7 = scmp.ge.s32.totalorder %s516_s12, 1  ;;  %p114_p8 = scmp.lt.s32.totalorder %s516_s12, 3 }
   0xc   : > { %p115_p9 = pnand %p392_p7, %p114_p8 }
   0xd   : > { %p134_p10 = scmp.lt.s32.totalorder (!%p115_p9), %s565_s13, 1  ;;  %s518_s6 = smov (!%p115_p9), 120  }
   0xe   : > { %118 = sbr.rel (%p115_p9) target bundleno = 942 (0x3ae), region = 28  ;;  %s519_s7 = smov (!%p115_p9), 112  }
   0xf   : > { %s522_s8 = smov (!%p115_p9), 8   ;;  %s523_s14 = smov (!%p115_p9), 48  }
  0x10   : > { %s524_s16 = smov (!%p115_p9), 16   ;;  %s525_s17 = smov (!%p115_p9), 32  }
  0x11   : > { %s526_s21 = smov (!%p115_p9), 24   ;;  %s527_s22 = smov (!%p115_p9), 40  }
  0x12   : > { %s528_s23 = smov (!%p115_p9), 56   ;;  %s132_s24 = sand.u32 (!%p115_p9), 1, %s508_s10  }
  0x13   : > { %v142_v0 = vld [vmem:[%s657_s1 + $0x18] sm:$0xff]  ;;  %v141_v1 = vld [vmem:[%s657_s1 + $0x10] sm:$0xff]  ;;  %v140_v2 = vld [vmem:[%s657_s1 + $0x8] sm:$0xff]  ;;  %s135_s27 = scalar_select %p134_p10, %s565_s13, 1  ;;  %vm143_vm0 = vcmask 261120   ;;  %vm171_vm1 = vcmask 64512   ;;  %v197_v8 = vlaneseq }
  0x14   : > { %159 = vmatpush.msra.mxu0 %v142_v0  ;;  %v139_v3 = vld [vmem:[%s657_s1] sm:$0xff]  ;;  %v520_v23 = vmov 1983009808   ;;  %v521_v25 = vmov 1934713408   ;;  %vm241_vm3 = vcmask 1047556  }
  0x15   : > { %s393_s30 = sshll.u32 %s135_s27, 3  ;;  %v198_v9 = vshrl.u32 %v197_v8, 7  ;;  %v200_v10 = vand.u32 127, %v197_v8  ;;  %v244_v24 = vunpack.c.l.s4 %v520_v23  ;;  %v254_v26 = vunpack.c.l.s4 %v521_v25  ;;  %s330_s27 = scalar_lea.hbm %s658_s2, %s565_s13 }
  0x16   : > { %160 = vmatpush.msra.mxu0 %v141_v1  ;;  %s137_s5 = scalar_lea.vmem %s656_s0, %s393_s30  ;;  %vm308_vm4 = vcmask 130048   ;;  %vm310_vm5 = vcmask 195584   ;;  %vm313_vm6 = vcmask 326656   ;;  %vm315_vm7 = vcmask 392192   ;;  %s133_s28 = scalar_lea.vmem [#allocation2], %s132_s24 }
  0x17   : > { %v138_v4 = vld [vmem:[%s137_s5] sm:$0xff]  ;;  %vm201_vm2 = vcmp.le.s32.totalorder %v200_v10, %v198_v9  ;;  %v245_v27 = vunpack.c.0.s8 %v244_v24  ;;  %v255_v28 = vunpack.c.0.s8 %v254_v26  ;;  %s332_s29 = sshll.u32 %s133_s28, 4  ;;  %s334_s30 = sshll.u32 %s330_s27, 4  ;;  %vm317_vm8 = vcmask 457728   ;;  %s333_s29 = int_to_ptr.vmem [resolvable:$true] %s332_s29  ;;  %s335_s30 = int_to_ptr.hbm [resolvable:$true] %s334_s30 }
  0x18   : > { %161 = vmatpush.msra.mxu0 %v140_v2  ;;  %vm319_vm9 = vcmask 516096   ;;  %s322_s3 = scalar_lea.sflag [#allocation3], %s132_s24  ;;  %s468_s4 = sshra.s32 %s335_s30, 4  ;;  %s469_s4 = int_to_ptr.hbm [resolvable:$true] %s468_s4 }
  0x19   : > { %s470_s13 = scalar_lea.hbm %s469_s4, 1  ;;  %p475_p0 = scmp.lt.s32.totalorder %s469_s4, %s658_s2 }
  0x1a   : > { %162 = vmatpush.msra.mxu0 %v139_v3  ;;  %p471_p11 = scmp.ne.s32.totalorder %s469_s4, %s470_s13 }
  0x1b   : > { %394 = vmatmul.msk.f32.vlgmr.msra.gmra.mxu0 %vm143_vm0, %v138_v4 }
  0x1c   : > { %p472_p12 = pnand %p471_p11, %p582_p5 }
  0x1e   : > { %p473_p13 = pneg %p472_p12 }
  0x98   : > { %v164_v5 = vpop.f32.mrf.mxu0 }
  0x99   : > { %169 = vrot.lane.b32.xlu0 %v164_v5, %s518_s6  ;;  %v167_v7 = vmul.f32 0.17677669, %v164_v5 }
 0x10b   : > { %v170_v6 = vpop.permute.xlu0 %169 }
 0x10c   : > { %395 = vmatpush.xpose.msk.msra.mxu1 %vm171_vm1, %v170_v6 }
 0x10f   : > { %396 = vmatmul.msk.f32.vlgmr.msra.gmra.mxu1 %vm171_vm1, %v167_v7 }
 0x18c   : > { %v194_v11 = vpop.f32.mrf.mxu1 }
 0x18d   : > { %v202_v12 = vsel %vm201_vm2, %v194_v11, -1e+30 }
 0x18e   : > { %v203_v13 = vsel %vm171_vm1, %v202_v12, -inf }
 0x18f   : > { %204 = vmax.xlane.f32.xlu0 %v203_v13 }
 0x202   : > { %v205_v14 = vpop.xlane.xlu0 %204 }
 0x203   : > { %v206_v15 = vsub.f32 %v202_v12, %v205_v14 }
 0x205   : > { %v207_v16 = vmul.f32 1.442695, %v206_v15 }
 0x207   : > { %450 = vpow2.f32 %v207_v16 }
 0x20d   : > { %v451_v17 = vpop.eup %450 }
 0x20e   : > { %v209_v18 = vsel %vm171_vm1, %v451_v17, 0.0 }
 0x20f   : > { %210 = vadd.xlane.f32.xlu1 %v209_v18 }
 0x228   : > { %214 = vrot.lane.b32.xlu1 %v164_v5, %s519_s7  ;;  %s474_s7 = scalar_lea.hbm %s658_s2, 2 }
 0x229   : > { %p476_p1 = scmp.lt.s32.totalorder %s474_s7, %s470_s13 }
 0x22b   : > { %p477_p2 = por %p476_p1, %p475_p0 }
 0x22d   : > { %p478_p3 = pnand %p477_p2, %p473_p13 }
 0x282   : > { %v211_v19 = vpop.xlane.xlu1 %210 }
 0x283   : > { %452 = vrcp.f32 %v211_v19 }
 0x289   : > { %v453_v20 = vpop.eup %452 }
 0x28a   : > { %v213_v22 = vmul.f32 %v453_v20, %v451_v17 }
 0x29a   : > { %v215_v21 = vpop.permute.xlu1 %214 }
 0x29b   : > { %235 = vmatpush.msra.mxu2 %v215_v21 }
 0x29c   : > { %397 = vmatmul.msk.f32.vlgmr.msra.gmra.mxu2 %vm171_vm1, %v213_v22 }
 0x31f   : > { %v237_v29 = vpop.f32.mrf.mxu2 }
 0x320   : > { %v240_v30 = vrot.slane %v237_v29, 4  ;;  %v246_v31 = vperm.slane %v237_v29, %v245_v27 }
 0x322   : > { %v242_v32 = vsel %vm241_vm3, 0.0, %v240_v30  ;;  %v256_v33 = vperm.slane %v246_v31, %v255_v28  ;;  %v251_v37 = vrot.slane %v246_v31, 4 }
 0x323   : > { %v250_v34 = vperm.slane %v242_v32, %v245_v27 }
 0x324   : > { %v271_v35 = vrot.slane %v256_v33, 4  ;;  %v252_v41 = vsel %vm241_vm3, 0.0, %v251_v37 }
 0x325   : > { %v261_v36 = vrot.slane %v250_v34, 4  ;;  %v260_v42 = vperm.slane %v252_v41, %v255_v28  ;;  %v266_v43 = vperm.slane %v250_v34, %v255_v28 }
 0x326   : > { %v272_v38 = vsel %vm241_vm3, 0.0, %v271_v35 }
 0x327   : > { %280 = vrot.lane.b32.xlu2 %v272_v38, %s522_s8  ;;  %v262_v39 = vsel %vm241_vm3, 0.0, %v261_v36  ;;  %v273_v44 = vrot.slane %v260_v42, 4  ;;  %v275_v46 = vrot.slane %v266_v43, 4 }
 0x328   : > { %v270_v40 = vperm.slane %v262_v39, %v255_v28 }
 0x329   : > { %v274_v45 = vsel %vm241_vm3, 0.0, %v273_v44  ;;  %v276_v47 = vsel %vm241_vm3, 0.0, %v275_v46 }
 0x32a   : > { %300 = vrot.lane.b32.xlu1 %v270_v40, %s523_s14  ;;  %v277_v48 = vrot.slane %v270_v40, 4 }
 0x32c   : > { %v278_v49 = vsel %vm241_vm3, 0.0, %v277_v48 }
 0x32f   : > { %284 = vrot.lane.b32.xlu2 %v260_v42, %s524_s16 }
 0x337   : > { %292 = vrot.lane.b32.xlu2 %v266_v43, %s525_s17 }
 0x33f   : > { %288 = vrot.lane.b32.xlu2 %v274_v45, %s526_s21 }
 0x347   : > { %296 = vrot.lane.b32.xlu2 %v276_v47, %s527_s22 }
 0x34f   : > { %304 = vrot.lane.b32.xlu2 %v278_v49, %s528_s23 }
 0x381   : > { %v281_v50 = vpop.permute.xlu2 %280 }
 0x382   : > { %v307_v54 = vsel %vm171_vm1, %v256_v33, %v281_v50 }
 0x389   : > { %v285_v51 = vpop.permute.xlu2 %284 }
 0x38a   : > { %v309_v55 = vsel %vm308_vm4, %v307_v54, %v285_v51 }
 0x391   : > { %v293_v52 = vpop.permute.xlu2 %292 }
 0x399   : > { %v289_v53 = vpop.permute.xlu2 %288 }
 0x39a   : > { %v311_v57 = vsel %vm310_vm5, %v309_v55, %v289_v53 }
 0x39b   : > { %v312_v58 = vsel %vm143_vm0, %v311_v57, %v293_v52 }
 0x39c   : > { %v301_v60 = vpop.permute.xlu1 %300 }
 0x3a1   : > { %v297_v56 = vpop.permute.xlu2 %296 }
 0x3a2   : > { %v314_v59 = vsel %vm313_vm6, %v312_v58, %v297_v56 }
 0x3a3   : > { %v316_v61 = vsel %vm315_vm7, %v314_v59, %v301_v60 }
 0x3a9   : > { %v305_v62 = vpop.permute.xlu2 %304 }
 0x3aa   : > { %v318_v63 = vsel %vm317_vm8, %v316_v61, %v305_v62 }
 0x3ab   : > { %320 = vst.msk [vmem:[%s133_s28] sm:$0x1] %vm319_vm9, %v318_v63 }
 0x3ac   : > { %481 = shalt.err (!%p478_p3)
}
 0x3ad   : > { %400 = dma.vmem_to_hbm [thread:$0]  (%p582_p5), %s333_s29, 16, %s335_s30, %s322_s3  }
 0x3ae PF: > { %p406_p4 = scmp.ge.s32.totalorder %s516_s12, 2  ;;  %s346_s16 = sand.u32 1, %s504_s9  }
 0x3af   : > { %s347_s17 = scalar_lea.sflag [#allocation3], %s346_s16 }
 0x3b0   : > { %p403_p7 = pnand %p406_p4, %p586_p6 }
 0x3b2   : > { %p404_p8 = pneg %p403_p7 }
 0x3b4   : > { %499 = dma.done.wait (%p404_p8), %s347_s17, 16  }
 0x3b5   : > { %501 = vsyncadd (%p404_p8), %s347_s17, 4294967280  ;;  %p12_p9 = scmp.ge.s32.totalorder %s569_s15, 4   ;;  %s661_s9 = smov %s508_s10 }
 0x3b6   : > { %s662_s10 = smov %s512_s11  ;;  %s663_s11 = smov %s580_s18 }
 0x3b7   : > { %s664_s12 = smov %s569_s15  ;;  %14 = sbr.rel (!%p12_p9) target bundleno = 3 (0x3), region = 63 }
 0x3bc   :  { %352 = vsyncpa [#allocation3], 1 }
 0x3bd   :  { %354 = vsyncpa [#allocation3 + $0x1], 1 }

// kernel: tpu_custom_call.1
= control target key start
LH: loop header
LB: loop body
LE: loop exit
PB: predicated region body
PF: predicated region fallthrough
CT: control target
= control target key end

     0   :  { %7 = vsyncpa [#allocation3], 0  ;;  %s560_s0 = inlined_call_operand.vmem [shape: f32[2,8,32], index: 0, kind: input, shape index: {}]   ;;  %s561_s1 = inlined_call_operand.vmem [shape: f32[32,24], index: 1, kind: input, shape index: {}]   ;;  %s562_s2 = inlined_call_operand.hbm [shape: f32[2,8,8], index: 2, kind: output, shape index: {}]  }
   0x1   :  { %9 = vsyncpa [#allocation3 + $0x1], 0  ;;  %s457_s9 = smov 0   ;;  %s459_s10 = smov 0  }
   0x2   :  { %s461_s11 = smov 0   ;;  %s463_s12 = smov 0  }
   0x3 LB: > { %s478_s13 = sadd.s32 4294967295, %s438_s12   ;;  %s317_s14 = sadd.s32 4294967294, %s438_s12   ;;  %s438_s12 = sphi %s463_s12, %s568_s12   ;;  %s434_s11 = sphi %s461_s11, %s567_s11   ;;  %s430_s10 = sphi %s459_s10, %s566_s10   ;;  %s426_s9 = sphi %s457_s9, %s565_s9  }
   0x4   : > { %s482_s15 = sadd.s32 1, %s438_s12   ;;  %s69_s16 = sadd.s32 1, %s434_s11 }
   0x5   : > { %s66_s17 = ssub.s32 %s438_s12, %s482_s15  ;;  %p79_p0 = scmp.ne.s32.totalorder %s434_s11, %s430_s10 }
   0x6   : > { %p67_p1 = scmp.eq.s32.totalorder %s66_s17, 0  ;;  %p80_p2 = scmp.eq.s32.totalorder %s478_s13, 1 }
   0x7   : > { %p85_p3 = scmp.ne.s32.totalorder %s430_s10, %s426_s9  ;;  %p86_p4 = scmp.eq.s32.totalorder %s317_s14, 1 }
   0x8   : > { %s493_s18 = scalar_select %p67_p1, %s434_s11, %s69_s16  }
   0x9   : > { %p495_p5 = por %p80_p2, %p79_p0  ;;  %p499_p6 = por %p86_p4, %p85_p3 }
   0xa   : > { %p320_p7 = scmp.ge.s32.totalorder %s438_s12, 1  ;;  %p114_p8 = scmp.lt.s32.totalorder %s438_s12, 3 }
   0xc   : > { %p115_p9 = pnand %p320_p7, %p114_p8 }
   0xd   : > { %p135_p10 = scmp.lt.s32.totalorder (!%p115_p9), %s478_s13, 1  ;;  %s440_s6 = smov (!%p115_p9), 120  }
   0xe   : > { %118 = sbr.rel (%p115_p9) target bundleno = 803 (0x323), region = 28  ;;  %s441_s7 = smov (!%p115_p9), 112  }
   0xf   : > { %s132_s8 = sand.u32 (!%p115_p9), 1, %s430_s10   ;;  %s328_s16 = sshll.u32 (!%p115_p9), %s478_s13, 3 }
  0x10   : > { %s321_s14 = sshll.u32 (!%p115_p9), %s132_s8, 3  ;;  %s253_s22 = scalar_lea.hbm (!%p115_p9), %s562_s2, %s328_s16 }
  0x11   : > { %s134_s23 = scalar_lea.vmem (!%p115_p9), [#allocation2], %s321_s14  ;;  %s257_s25 = sshll.u32 (!%p115_p9), %s253_s22, 4  ;;  %s258_s25 = int_to_ptr.hbm [resolvable:$true] %s257_s25 }
  0x12   : > { %s255_s24 = sshll.u32 (!%p115_p9), %s134_s23, 4  ;;  %s243_s26 = scalar_lea.sflag (!%p115_p9), [#allocation3], %s132_s8  ;;  %s256_s24 = int_to_ptr.vmem [resolvable:$true] %s255_s24 }
  0x13   : > { %v143_v0 = vld [vmem:[%s561_s1 + $0x18] sm:$0xff]  ;;  %v142_v1 = vld [vmem:[%s561_s1 + $0x10] sm:$0xff]  ;;  %v141_v2 = vld [vmem:[%s561_s1 + $0x8] sm:$0xff]  ;;  %s136_s27 = scalar_select %p135_p10, %s478_s13, 1  ;;  %vm144_vm0 = vcmask 261120   ;;  %vm172_vm1 = vcmask 64512   ;;  %v198_v8 = vlaneseq }
  0x14   : > { %160 = vmatpush.msra.mxu0 %v143_v0  ;;  %v140_v3 = vld [vmem:[%s561_s1] sm:$0xff] }
  0x15   : > { %s322_s30 = sshll.u32 %s136_s27, 3  ;;  %v199_v9 = vshrl.u32 %v198_v8, 7  ;;  %v201_v10 = vand.u32 127, %v198_v8  ;;  %s390_s27 = sshra.s32 %s258_s25, 4  ;;  %s391_s27 = int_to_ptr.hbm [resolvable:$true] %s390_s27 }
  0x16   : > { %161 = vmatpush.msra.mxu0 %v142_v1  ;;  %s138_s5 = scalar_lea.vmem %s560_s0, %s322_s30  ;;  %s392_s28 = scalar_lea.hbm %s391_s27, 8 }
  0x17   : > { %v139_v4 = vld [vmem:[%s138_s5] sm:$0xff]  ;;  %vm202_vm2 = vcmp.le.s32.totalorder %v201_v10, %v199_v9  ;;  %p393_p11 = scmp.ne.s32.totalorder %s391_s27, %s392_s28  ;;  %s396_s30 = scalar_lea.hbm %s562_s2, 16 }
  0x18   : > { %162 = vmatpush.msra.mxu0 %v141_v2  ;;  %p397_p0 = scmp.lt.s32.totalorder %s391_s27, %s562_s2  ;;  %p398_p1 = scmp.lt.s32.totalorder %s396_s30, %s392_s28 }
  0x19   : > { %p394_p12 = pnand %p393_p11, %p495_p5 }
  0x1a   : > { %163 = vmatpush.msra.mxu0 %v140_v3  ;;  %p399_p2 = por %p398_p1, %p397_p0 }
  0x1b   : > { %323 = vmatmul.msk.f32.vlgmr.msra.gmra.mxu0 %vm144_vm0, %v139_v4  ;;  %p395_p13 = pneg %p394_p12 }
  0x1d   : > { %p400_p3 = pnand %p399_p2, %p395_p13 }
  0x98   : > { %v165_v5 = vpop.f32.mrf.mxu0 }
  0x99   : > { %170 = vrot.lane.b32.xlu0 %v165_v5, %s440_s6  ;;  %v168_v7 = vmul.f32 0.17677669, %v165_v5 }
 0x10b   : > { %v171_v6 = vpop.permute.xlu0 %170 }
 0x10c   : > { %324 = vmatpush.xpose.msk.msra.mxu1 %vm172_vm1, %v171_v6 }
 0x10f   : > { %325 = vmatmul.msk.f32.vlgmr.msra.gmra.mxu1 %vm172_vm1, %v168_v7 }
 0x18c   : > { %v195_v11 = vpop.f32.mrf.mxu1 }
 0x18d   : > { %v203_v12 = vsel %vm202_vm2, %v195_v11, -1e+30 }
 0x18e   : > { %v204_v13 = vsel %vm172_vm1, %v203_v12, -inf }
 0x18f   : > { %205 = vmax.xlane.f32.xlu0 %v204_v13 }
 0x202   : > { %v206_v14 = vpop.xlane.xlu0 %205 }
 0x203   : > { %v207_v15 = vsub.f32 %v203_v12, %v206_v14 }
 0x205   : > { %v208_v16 = vmul.f32 1.442695, %v207_v15 }
 0x207   : > { %372 = vpow2.f32 %v208_v16 }
 0x20d   : > { %v373_v17 = vpop.eup %372 }
 0x20e   : > { %v210_v18 = vsel %vm172_vm1, %v373_v17, 0.0 }
 0x20f   : > { %211 = vadd.xlane.f32.xlu1 %v210_v18 }
 0x228   : > { %215 = vrot.lane.b32.xlu1 %v165_v5, %s441_s7 }
 0x282   : > { %v212_v19 = vpop.xlane.xlu1 %211 }
 0x283   : > { %374 = vrcp.f32 %v212_v19 }
 0x289   : > { %v375_v20 = vpop.eup %374 }
 0x28a   : > { %v214_v22 = vmul.f32 %v375_v20, %v373_v17 }
 0x29a   : > { %v216_v21 = vpop.permute.xlu1 %215 }
 0x29b   : > { %236 = vmatpush.msra.mxu2 %v216_v21 }
 0x29c   : > { %326 = vmatmul.msk.f32.vlgmr.msra.gmra.mxu2 %vm172_vm1, %v214_v22 }
 0x31f   : > { %v238_v23 = vpop.f32.mrf.mxu2 }
 0x320   : > { %241 = vst.msk [vmem:[%s134_s23] sm:$0xff] %vm172_vm1, %v238_v23 }
 0x321   : > { %403 = shalt.err (!%p400_p3)
}
 0x322   : > { %331 = dma.vmem_to_hbm [thread:$0]  (%p495_p5), %s256_s24, 128, %s258_s25, %s243_s26  }
 0x323 PF: > { %p337_p4 = scmp.ge.s32.totalorder %s438_s12, 2  ;;  %s269_s5 = sand.u32 1, %s426_s9  }
 0x324   : > { %s270_s6 = scalar_lea.sflag [#allocation3], %s269_s5 }
 0x325   : > { %p334_p7 = pnand %p337_p4, %p499_p6 }
 0x327   : > { %p335_p8 = pneg %p334_p7 }
 0x329   : > { %421 = dma.done.wait (%p335_p8), %s270_s6, 128  }
 0x32a   : > { %423 = vsyncadd (%p335_p8), %s270_s6, 4294967168  ;;  %p12_p9 = scmp.ge.s32.totalorder %s482_s15, 4   ;;  %s565_s9 = smov %s430_s10 }
 0x32b   : > { %s566_s10 = smov %s434_s11  ;;  %s567_s11 = smov %s493_s18 }
 0x32c   : > { %s568_s12 = smov %s482_s15  ;;  %14 = sbr.rel (!%p12_p9) target bundleno = 3 (0x3), region = 63 }
 0x331   :  { %276 = vsyncpa [#allocation3], 1 }
 0x332   :  { %278 = vsyncpa [#allocation3 + $0x1], 1 }

// kernel: tpu_custom_call.1
= control target key start
LH: loop header
LB: loop body
LE: loop exit
PB: predicated region body
PF: predicated region fallthrough
CT: control target
= control target key end

     0   :  { %7 = vsyncpa [#allocation3], 0  ;;  %s560_s0 = inlined_call_operand.vmem [shape: f32[2,8,32], index: 0, kind: input, shape index: {}]   ;;  %s561_s1 = inlined_call_operand.vmem [shape: f32[32,24], index: 1, kind: input, shape index: {}]   ;;  %s562_s2 = inlined_call_operand.hbm [shape: f32[2,8,8], index: 2, kind: output, shape index: {}]  }
   0x1   :  { %9 = vsyncpa [#allocation3 + $0x1], 0  ;;  %s457_s9 = smov 0   ;;  %s459_s10 = smov 0  }
   0x2   :  { %s461_s11 = smov 0   ;;  %s463_s12 = smov 0  }
   0x3 LB: > { %s478_s13 = sadd.s32 4294967295, %s438_s12   ;;  %s317_s14 = sadd.s32 4294967294, %s438_s12   ;;  %s438_s12 = sphi %s463_s12, %s568_s12   ;;  %s434_s11 = sphi %s461_s11, %s567_s11   ;;  %s430_s10 = sphi %s459_s10, %s566_s10   ;;  %s426_s9 = sphi %s457_s9, %s565_s9  }
   0x4   : > { %s482_s15 = sadd.s32 1, %s438_s12   ;;  %s69_s16 = sadd.s32 1, %s434_s11 }
   0x5   : > { %s66_s17 = ssub.s32 %s438_s12, %s482_s15  ;;  %p79_p0 = scmp.ne.s32.totalorder %s434_s11, %s430_s10 }
   0x6   : > { %p67_p1 = scmp.eq.s32.totalorder %s66_s17, 0  ;;  %p80_p2 = scmp.eq.s32.totalorder %s478_s13, 1 }
   0x7   : > { %p85_p3 = scmp.ne.s32.totalorder %s430_s10, %s426_s9  ;;  %p86_p4 = scmp.eq.s32.totalorder %s317_s14, 1 }
   0x8   : > { %s493_s18 = scalar_select %p67_p1, %s434_s11, %s69_s16  }
   0x9   : > { %p495_p5 = por %p80_p2, %p79_p0  ;;  %p499_p6 = por %p86_p4, %p85_p3 }
   0xa   : > { %p320_p7 = scmp.ge.s32.totalorder %s438_s12, 1  ;;  %p114_p8 = scmp.lt.s32.totalorder %s438_s12, 3 }
   0xc   : > { %p115_p9 = pnand %p320_p7, %p114_p8 }
   0xd   : > { %p135_p10 = scmp.lt.s32.totalorder (!%p115_p9), %s478_s13, 1  ;;  %s440_s6 = smov (!%p115_p9), 120  }
   0xe   : > { %118 = sbr.rel (%p115_p9) target bundleno = 803 (0x323), region = 28  ;;  %s441_s7 = smov (!%p115_p9), 112  }
   0xf   : > { %s132_s8 = sand.u32 (!%p115_p9), 1, %s430_s10   ;;  %s328_s16 = sshll.u32 (!%p115_p9), %s478_s13, 3 }
  0x10   : > { %s321_s14 = sshll.u32 (!%p115_p9), %s132_s8, 3  ;;  %s253_s22 = scalar_lea.hbm (!%p115_p9), %s562_s2, %s328_s16 }
  0x11   : > { %s134_s23 = scalar_lea.vmem (!%p115_p9), [#allocation2], %s321_s14  ;;  %s257_s25 = sshll.u32 (!%p115_p9), %s253_s22, 4  ;;  %s258_s25 = int_to_ptr.hbm [resolvable:$true] %s257_s25 }
  0x12   : > { %s255_s24 = sshll.u32 (!%p115_p9), %s134_s23, 4  ;;  %s243_s26 = scalar_lea.sflag (!%p115_p9), [#allocation3], %s132_s8  ;;  %s256_s24 = int_to_ptr.vmem [resolvable:$true] %s255_s24 }
  0x13   : > { %v143_v0 = vld [vmem:[%s561_s1 + $0x18] sm:$0xff]  ;;  %v142_v1 = vld [vmem:[%s561_s1 + $0x10] sm:$0xff]  ;;  %v141_v2 = vld [vmem:[%s561_s1 + $0x8] sm:$0xff]  ;;  %s136_s27 = scalar_select %p135_p10, %s478_s13, 1  ;;  %vm144_vm0 = vcmask 261120   ;;  %vm172_vm1 = vcmask 64512   ;;  %v198_v8 = vlaneseq }
  0x14   : > { %160 = vmatpush.msra.mxu0 %v143_v0  ;;  %v140_v3 = vld [vmem:[%s561_s1] sm:$0xff] }
  0x15   : > { %s322_s30 = sshll.u32 %s136_s27, 3  ;;  %v199_v9 = vshrl.u32 %v198_v8, 7  ;;  %v201_v10 = vand.u32 127, %v198_v8  ;;  %s390_s27 = sshra.s32 %s258_s25, 4  ;;  %s391_s27 = int_to_ptr.hbm [resolvable:$true] %s390_s27 }
  0x16   : > { %161 = vmatpush.msra.mxu0 %v142_v1  ;;  %s138_s5 = scalar_lea.vmem %s560_s0, %s322_s30  ;;  %s392_s28 = scalar_lea.hbm %s391_s27, 8 }
  0x17   : > { %v139_v4 = vld [vmem:[%s138_s5] sm:$0xff]  ;;  %vm202_vm2 = vcmp.le.s32.totalorder %v201_v10, %v199_v9  ;;  %p393_p11 = scmp.ne.s32.totalorder %s391_s27, %s392_s28  ;;  %s396_s30 = scalar_lea.hbm %s562_s2, 16 }
  0x18   : > { %162 = vmatpush.msra.mxu0 %v141_v2  ;;  %p397_p0 = scmp.lt.s32.totalorder %s391_s27, %s562_s2  ;;  %p398_p1 = scmp.lt.s32.totalorder %s396_s30, %s392_s28 }
  0x19   : > { %p394_p12 = pnand %p393_p11, %p495_p5 }
  0x1a   : > { %163 = vmatpush.msra.mxu0 %v140_v3  ;;  %p399_p2 = por %p398_p1, %p397_p0 }
  0x1b   : > { %323 = vmatmul.msk.f32.vlgmr.msra.gmra.mxu0 %vm144_vm0, %v139_v4  ;;  %p395_p13 = pneg %p394_p12 }
  0x1d   : > { %p400_p3 = pnand %p399_p2, %p395_p13 }
  0x98   : > { %v165_v5 = vpop.f32.mrf.mxu0 }
  0x99   : > { %170 = vrot.lane.b32.xlu0 %v165_v5, %s440_s6  ;;  %v168_v7 = vmul.f32 0.17677669, %v165_v5 }
 0x10b   : > { %v171_v6 = vpop.permute.xlu0 %170 }
 0x10c   : > { %324 = vmatpush.xpose.msk.msra.mxu1 %vm172_vm1, %v171_v6 }
 0x10f   : > { %325 = vmatmul.msk.f32.vlgmr.msra.gmra.mxu1 %vm172_vm1, %v168_v7 }
 0x18c   : > { %v195_v11 = vpop.f32.mrf.mxu1 }
 0x18d   : > { %v203_v12 = vsel %vm202_vm2, %v195_v11, -1e+30 }
 0x18e   : > { %v204_v13 = vsel %vm172_vm1, %v203_v12, -inf }
 0x18f   : > { %205 = vmax.xlane.f32.xlu0 %v204_v13 }
 0x202   : > { %v206_v14 = vpop.xlane.xlu0 %205 }
 0x203   : > { %v207_v15 = vsub.f32 %v203_v12, %v206_v14 }
 0x205   : > { %v208_v16 = vmul.f32 1.442695, %v207_v15 }
 0x207   : > { %372 = vpow2.f32 %v208_v16 }
 0x20d   : > { %v373_v17 = vpop.eup %372 }
 0x20e   : > { %v210_v18 = vsel %vm172_vm1, %v373_v17, 0.0 }
 0x20f   : > { %211 = vadd.xlane.f32.xlu1 %v210_v18 }
 0x228   : > { %215 = vrot.lane.b32.xlu1 %v165_v5, %s441_s7 }
 0x282   : > { %v212_v19 = vpop.xlane.xlu1 %211 }
 0x283   : > { %374 = vrcp.f32 %v212_v19 }
 0x289   : > { %v375_v20 = vpop.eup %374 }
 0x28a   : > { %v214_v22 = vmul.f32 %v375_v20, %v373_v17 }
 0x29a   : > { %v216_v21 = vpop.permute.xlu1 %215 }
 0x29b   : > { %236 = vmatpush.msra.mxu2 %v216_v21 }
 0x29c   : > { %326 = vmatmul.msk.f32.vlgmr.msra.gmra.mxu2 %vm172_vm1, %v214_v22 }
 0x31f   : > { %v238_v23 = vpop.f32.mrf.mxu2 }
 0x320   : > { %241 = vst.msk [vmem:[%s134_s23] sm:$0xff] %vm172_vm1, %v238_v23 }
 0x321   : > { %403 = shalt.err (!%p400_p3)
}
 0x322   : > { %331 = dma.vmem_to_hbm [thread:$0]  (%p495_p5), %s256_s24, 128, %s258_s25, %s243_s26  }
 0x323 PF: > { %p337_p4 = scmp.ge.s32.totalorder %s438_s12, 2  ;;  %s269_s5 = sand.u32 1, %s426_s9  }
 0x324   : > { %s270_s6 = scalar_lea.sflag [#allocation3], %s269_s5 }
 0x325   : > { %p334_p7 = pnand %p337_p4, %p499_p6 }
 0x327   : > { %p335_p8 = pneg %p334_p7 }
 0x329   : > { %421 = dma.done.wait (%p335_p8), %s270_s6, 128  }
 0x32a   : > { %423 = vsyncadd (%p335_p8), %s270_s6, 4294967168  ;;  %p12_p9 = scmp.ge.s32.totalorder %s482_s15, 4   ;;  %s565_s9 = smov %s430_s10 }
 0x32b   : > { %s566_s10 = smov %s434_s11  ;;  %s567_s11 = smov %s493_s18 }
 0x32c   : > { %s568_s12 = smov %s482_s15  ;;  %14 = sbr.rel (!%p12_p9) target bundleno = 3 (0x3), region = 63 }
 0x331   :  { %276 = vsyncpa [#allocation3], 1 }
 0x332   :  { %278 = vsyncpa [#allocation3 + $0x1], 1 }

</bundles_post_ra>
